<compile_context>
chip_gen: v6e
topology: v6e:2x2x1
jax: 0.10.0
libtpu: 0.0.40
codegen_flags: <defaults>
</compile_context>

<pallas_src>
import functools

import jax
import jax.numpy as jnp
from jax.experimental import pallas as pl
from jax.experimental.pallas import tpu as pltpu

_LANE = 128            # TPU lane width: keep the reduction slab lane-dense.
_MAX_TILE_ROWS = 512   # 512*128*4 B = 256 KiB per input block
                       # (x2 inputs x2 pipeline buffers ~= 1 MiB VMEM, fits every generation).


# ------------------------------ Pallas kernel -------------------------------

def _l1_sum_kernel(a_ref, b_ref, o_ref, acc_ref):
    """Accumulate sum(|a - b|) across the row-tile grid axis.

    acc_ref: (1, 128) f32 VMEM scratch with per-lane partial sums. The
    cross-lane reduction + (1, 1) store run only on the final grid step.
    """
    i = pl.program_id(0)

    @pl.when(i == 0)
    def _init():
        acc_ref[...] = jnp.zeros_like(acc_ref)

    diff = jnp.abs(a_ref[...] - b_ref[...])                   # (TR, 128) f32, VPU
    acc_ref[...] += jnp.sum(diff, axis=0, keepdims=True)      # sublane reduce -> (1, 128)

    @pl.when(i == pl.num_programs(0) - 1)
    def _finalize():
        o_ref[...] = jnp.sum(acc_ref[...], axis=1, keepdims=True)   # (1, 1)


# ------------------------------ Python wrapper ------------------------------

def _as_padded_2d(flat, padded_rows):
    n = flat.shape[0]
    flat = jnp.pad(flat, (0, padded_rows * _LANE - n))
    return flat.reshape(padded_rows, _LANE)


def pallas_l1_mean(a, b):
    """mean(|a - b|) with PyTorch-style broadcasting, via a tiled Pallas reduction."""
    a, b = jnp.broadcast_arrays(a, b)      # nn.L1Loss broadcasts mismatched shapes
    n = a.size

    flat_a = jnp.ravel(a).astype(jnp.float32)
    flat_b = jnp.ravel(b).astype(jnp.float32)

    # Static (trace-time) tile geometry: rows multiple of 8, tiles <= _MAX_TILE_ROWS.
    needed_rows = -(-n // _LANE)
    tile_rows = max(8, min(_MAX_TILE_ROWS, -(-needed_rows // 8) * 8))
    num_tiles = -(-needed_rows // tile_rows)
    padded_rows = num_tiles * tile_rows

    a2 = _as_padded_2d(flat_a, padded_rows)   # zero padding contributes |0 - 0| = 0
    b2 = _as_padded_2d(flat_b, padded_rows)

    total = pl.pallas_call(
        _l1_sum_kernel,
        out_shape=jax.ShapeDtypeStruct((1, 1), jnp.float32),
        grid=(num_tiles,),
        in_specs=[pl.BlockSpec((tile_rows, _LANE), lambda i: (i, 0)),
                  pl.BlockSpec((tile_rows, _LANE), lambda i: (i, 0))],
        out_specs=pl.BlockSpec((1, 1), lambda i: (0, 0)),   # resident across reduction axis
        scratch_shapes=[pltpu.VMEM((1, _LANE), jnp.float32)],
        compiler_params=pltpu.CompilerParams(
            dimension_semantics=("arbitrary",)),            # accumulation axis
    )(a2, b2)

    return total[0, 0] / float(n)


def loss_match_forward(e_vectors, W, match_weight=10.0):
    """LossMatch.forward: nn.L1Loss()(e_vectors, W) * match_weight."""
    return pallas_l1_mean(e_vectors, W) * match_weight


# ----------------------------------- main -----------------------------------

if __name__ == "__main__":
    key = jax.random.PRNGKey(0)
    k_e, k_w = jax.random.split(key, 2)

    # e_vectors / W shaped like the embedder outputs: (B, K, hidden, 1), small.
    B, K, hidden = 2, 8, 32
    e_vectors = jax.random.normal(k_e, (B, K, hidden, 1), jnp.float32)
    W = jax.random.normal(k_w, (B, K, hidden, 1), jnp.float32)

    fwd = jax.jit(functools.partial(loss_match_forward, match_weight=10.0))
    loss = jax.block_until_ready(fwd(e_vectors, W))

    ref = jnp.mean(jnp.abs(e_vectors - W)) * 10.0
    assert jnp.isfinite(loss)
    assert jnp.allclose(loss, ref, rtol=1e-5, atol=1e-5)
    print("KERNEL_OK")
</pallas_src>

<mosaic_0001>
module attributes {stable_mosaic.version = 11 : i64} {
  func.func @_l1_sum_kernel(%arg0: i32, %arg1: memref<8x128xf32, #tpu.memory_space<vmem>>, %arg2: memref<8x128xf32, #tpu.memory_space<vmem>>, %arg3: memref<1x1xf32, #tpu.memory_space<vmem>>, %arg4: memref<1x128xf32, #tpu.memory_space<vmem>>) attributes {dimension_semantics = [#tpu.dimension_semantics<arbitrary>], iteration_bounds = array<i64: 1>, scalar_prefetch = 0 : i64, scratch_operands = 1 : i64, tpu.core_type = #tpu.core_type<tc>, window_params = [{transform_indices = @transform_0, window_bounds = array<i64: 8, 128>}, {transform_indices = @transform_1, window_bounds = array<i64: 8, 128>}, {pipeline_mode = #tpu.pipeline_mode<synchronous>, transform_indices = @transform_2, window_bounds = array<i64: 1, 1>}]} {
    %c0_i32 = arith.constant 0 : i32
    %0 = arith.cmpi eq, %arg0, %c0_i32 : i32
    %1 = arith.extui %0 : i1 to i32
    %c0_i32_0 = arith.constant 0 : i32
    %2 = arith.cmpi ne, %1, %c0_i32_0 : i32
    scf.if %2 {
      %cst_10 = arith.constant 0.000000e+00 : f32
      %15 = vector.broadcast %cst_10 : f32 to vector<1x128xf32>
      %c0_11 = arith.constant 0 : index
      %c0_12 = arith.constant 0 : index
      %16 = vector.load %arg4[%c0_11, %c0_12] : memref<1x128xf32, #tpu.memory_space<vmem>>, vector<1x128xf32>
      tpu.vector_store %arg4[%c0_11, %c0_12], %15 {strides = array<i32>} : memref<1x128xf32, #tpu.memory_space<vmem>>, vector<1x128xf32>,
    } else {
    }
    %c0 = arith.constant 0 : index
    %c0_1 = arith.constant 0 : index
    %3 = vector.load %arg1[%c0, %c0_1] : memref<8x128xf32, #tpu.memory_space<vmem>>, vector<8x128xf32>
    %c0_2 = arith.constant 0 : index
    %c0_3 = arith.constant 0 : index
    %4 = vector.load %arg2[%c0_2, %c0_3] : memref<8x128xf32, #tpu.memory_space<vmem>>, vector<8x128xf32>
    %5 = arith.subf %3, %4 : vector<8x128xf32>
    %6 = math.absf %5 : vector<8x128xf32>
    %c0_4 = arith.constant 0 : index
    %c0_5 = arith.constant 0 : index
    %7 = vector.load %arg4[%c0_4, %c0_5] : memref<1x128xf32, #tpu.memory_space<vmem>>, vector<1x128xf32>
    %cst = arith.constant dense<0.000000e+00> : vector<128xf32>
    %8 = vector.multi_reduction <add>, %6, %cst [0] : vector<8x128xf32> to vector<128xf32>
    %9 = vector.shape_cast %8 : vector<128xf32> to vector<1x128xf32>
    %10 = arith.addf %7, %9 : vector<1x128xf32>
    %c0_6 = arith.constant 0 : index
    %c0_7 = arith.constant 0 : index
    %11 = vector.load %arg4[%c0_6, %c0_7] : memref<1x128xf32, #tpu.memory_space<vmem>>, vector<1x128xf32>
    tpu.vector_store %arg4[%c0_6, %c0_7], %10 {strides = array<i32>} : memref<1x128xf32, #tpu.memory_space<vmem>>, vector<1x128xf32>,
    %c0_i32_8 = arith.constant 0 : i32
    %12 = arith.cmpi eq, %arg0, %c0_i32_8 : i32
    %13 = arith.extui %12 : i1 to i32
    %c0_i32_9 = arith.constant 0 : i32
    %14 = arith.cmpi ne, %13, %c0_i32_9 : i32
    scf.if %14 {
      %c0_10 = arith.constant 0 : index
      %c0_11 = arith.constant 0 : index
      %15 = vector.load %arg4[%c0_10, %c0_11] : memref<1x128xf32, #tpu.memory_space<vmem>>, vector<1x128xf32>
      %cst_12 = arith.constant dense<0.000000e+00> : vector<1xf32>
      %16 = vector.multi_reduction <add>, %15, %cst_12 [1] : vector<1x128xf32> to vector<1xf32>
      %17 = vector.shape_cast %16 : vector<1xf32> to vector<1x1xf32>
      %c0_13 = arith.constant 0 : index
      %c0_14 = arith.constant 0 : index
      %18 = vector.load %arg3[%c0_13, %c0_14] : memref<1x1xf32, #tpu.memory_space<vmem>>, vector<1x1xf32>
      tpu.vector_store %arg3[%c0_13, %c0_14], %17 {strides = array<i32>} : memref<1x1xf32, #tpu.memory_space<vmem>>, vector<1x1xf32>,
    } else {
    }
    return
  }
  func.func @transform_0(%arg0: i32) -> (i32, i32) {
    %c0_i32 = arith.constant 0 : i32
    %c0_i32_0 = arith.constant 0 : i32
    return %arg0, %c0_i32 : i32, i32
  }
  func.func @transform_1(%arg0: i32) -> (i32, i32) {
    %c0_i32 = arith.constant 0 : i32
    %c0_i32_0 = arith.constant 0 : i32
    return %arg0, %c0_i32 : i32, i32
  }
  func.func @transform_2(%arg0: i32) -> (i32, i32) {
    %c0_i32 = arith.constant 0 : i32
    %c0_i32_0 = arith.constant 0 : i32
    %c0_i32_1 = arith.constant 0 : i32
    return %c0_i32, %c0_i32_0 : i32, i32
  }
}

</mosaic_0001>

<bundles_post_ra>
// kernel: loss_match_forward.1
= control target key start
LH: loop header
LB: loop body
LE: loop exit
PB: predicated region body
PF: predicated region fallthrough
CT: control target
= control target key end

     0   :  { %s104_s0 = inlined_call_operand.vmem [shape: f32[8,128], index: 0, kind: input, shape index: {}]   ;;  %s105_s1 = inlined_call_operand.vmem [shape: f32[8,128], index: 1, kind: input, shape index: {}]   ;;  %s106_s2 = inlined_call_operand.hbm [shape: f32[1,1], index: 2, kind: output, shape index: {}]  }
   0x1   :  { %v17_v0 = vld [vmem:[%s104_s0] sm:$0xff] }
   0x2   :  { %v18_v1 = vld [vmem:[%s105_s1] sm:$0xff] }
   0x3   :  { %7 = vsyncpa [#allocation4], 0  ;;  %v78_v2 = vmov 0.0   ;;  %v19_v3 = vsub.f32 %v17_v0, %v18_v1  ;;  %vm34_vm0 = vcmask 1040384   ;;  %s79_s0 = smov [#allocation3]   ;;  %vm38_vm1 = vcmask 0  }
   0x4   :  { %16 = vst [vmem:[#allocation2] sm:$0x1] %v78_v2  ;;  %s46_s1 = sshll.u32 %s79_s0, 4  ;;  %s47_s1 = int_to_ptr.vmem [resolvable:$true] %s46_s1 }
   0x5   :  { %v20_v4 = vand.u32 2147483647, %v19_v3  ;;  %s56_s13 = scalar_lea.vmem %s47_s1, 16  ;;  %s60_s14 = scalar_lea.vmem %s47_s1, 32 }
   0x6   :  { %p57_p0 = scmp.ne.s32.totalorder %s47_s1, %s56_s13  ;;  %p61_p1 = scmp.lt.s32.totalorder %s47_s1, %s47_s1 }
   0x7   :  { %v22_v5 = vrot.slane %v20_v4, 4  ;;  %p62_p2 = scmp.lt.s32.totalorder %s60_s14, %s56_s13 }
   0x9   :  { %v23_v6 = vadd.f32 %v22_v5, %v20_v4  ;;  %p63_p3 = por %p62_p2, %p61_p1 }
   0xb   :  { %v24_v7 = vrot.slane %v23_v6, 2  ;;  %v21_v10 = vld [vmem:[#allocation2] sm:$0x1]  ;;  %p64_p4 = pnand %p63_p3, %p57_p0 }
   0xd   :  { %v25_v8 = vadd.f32 %v24_v7, %v23_v6 }
   0xf   :  { %v26_v9 = vrot.slane %v25_v8, 1 }
  0x11   :  { %v27_v11 = vadd.f32 %v26_v9, %v25_v8 }
  0x13   :  { %v28_v12 = vadd.f32 %v27_v11, %v21_v10 }
  0x15   :  { %29 = vst [vmem:[#allocation2] sm:$0x1] %v28_v12 }
  0x1c   :  { %v33_v13 = vld [vmem:[#allocation2] sm:$0x1] }
  0x1d   :  { %v35_v14 = vsel %vm34_vm0, %v33_v13, 0.0 }
  0x1e   :  { %36 = vadd.xlane.f32.xlu0 %v35_v14 }
  0xa7   :  { %v37_v15 = vpop.xlane.xlu0 %36 }
  0xa8   :  { %39 = vst.msk [vmem:[#allocation3] sm:$0x1] %vm38_vm1, %v37_v15 }
  0xa9   :  { %67 = shalt.err (!%p64_p4)
}
  0xaa   :  { %49 = dma.vmem_to_hbm [thread:$0]  %s47_s1, 16, %s106_s2, [#allocation4]  }
  0xab   :  { %76 = dma.done.wait [#allocation4], 16  }
  0xac   :  { %77 = vsyncadd [#allocation4], 4294967280 }
  0xad   :  { %53 = vsyncpa [#allocation4], 1 }

</bundles_post_ra>
